<compile_context>
chip_gen: v5e
topology: v5e:2x2
jax: 0.10.0
libtpu: 0.0.40
codegen_flags: <defaults>
</compile_context>

<pallas_src>
import jax
import jax.numpy as jnp
from jax.experimental import pallas as pl
from jax.experimental.pallas import tpu as pltpu


def _normalization_kernel(img_ref, mean_ref, inv_std_ref, out_ref):
    # img_ref / out_ref: (row_block, col_block) VMEM tiles (image dtype)
    # mean_ref / inv_std_ref: (row_block, 1) f32 per-row params, broadcast over lanes.
    x = img_ref[...]
    out_ref[...] = ((x - mean_ref[...]) * inv_std_ref[...]).astype(out_ref.dtype)


def _pick_blocks(rows, cols, itemsize):
    """Choose (row_block, col_block): ~4 MiB data tiles, (8,128)-legal, dtype-aware."""
    # Native sublane packing per element width (f32:8, bf16/f16:16, int8/fp8:32).
    sublane = {4: 8, 2: 16, 1: 32}.get(itemsize, 8)
    TARGET_TILE_BYTES = 4 * 1024 * 1024   # ~4 MiB per data tile
    MAX_ROW_BLOCK = 1024                  # keep lane-padded (rb,1) param buffers small

    # Lane (last) axis: keep the full flattened plane when it fits the target with the
    # minimum sublane count, else a large multiple of 128 (edge blocks are padded).
    if cols * sublane * itemsize <= TARGET_TILE_BYTES:
        col_block = cols                                   # full extent -> always legal
    else:
        col_block = (TARGET_TILE_BYTES // (sublane * itemsize) // 128) * 128
        col_block = max(128, min(col_block, (cols // 128) * 128))

    # Sublane (second-to-last) axis.
    row_block = TARGET_TILE_BYTES // (col_block * itemsize)
    row_block = min(row_block, MAX_ROW_BLOCK, rows)
    if row_block >= rows:
        row_block = rows                                   # full extent -> always legal
    else:
        row_block = max(sublane, (row_block // sublane) * sublane)

    # v7x has two TensorCores: make sure the row (parallel) axis has >= 2 blocks when
    # the array allows it, so both cores get work. Near no-op on single-TC chips.
    if row_block == rows and rows >= 2 * sublane:
        half = (rows + 1) // 2
        row_block = max(sublane, (half // sublane) * sublane)

    return row_block, col_block


def _vmem_limit_bytes(row_block, col_block, itemsize):
    """Explicit scoped-VMEM budget covering all double-buffered tiles + headroom."""
    data_tile = row_block * col_block * itemsize
    param_tile = max(row_block, 8) * 128 * 4      # (row_block, 1) f32, lane-padded to 128
    needed = 2 * 2 * data_tile + 2 * 2 * param_tile   # 2x(in)+2x(out)+2x2 param buffers
    # >= 32 MiB (raises v5e's 16 MiB default), capped at 48 MiB (v7x physical is 64 MiB).
    return min(max(32 * 1024 * 1024, needed + (4 << 20)), 48 * 1024 * 1024)


def normalization(img, mean, std):
    """img: (N, C, H, W); mean/std: per-channel (C,).

    Returns (img - mean[:, None, None]) / std[:, None, None], matching the torch module.
    """
    N, C, H, W = img.shape
    dtype = img.dtype
    itemsize = jnp.dtype(dtype).itemsize

    # Params in float32: exact reciprocal once (C elements), kernel upcasts per tile.
    mean_f32 = jnp.asarray(mean, dtype=jnp.float32).reshape(-1)
    std_f32 = jnp.asarray(std, dtype=jnp.float32).reshape(-1)
    assert mean_f32.shape == (C,) and std_f32.shape == (C,)
    inv_std_f32 = 1.0 / std_f32

    rows = N * C
    cols = H * W

    # Lane-dense layout: spatial plane on the lane axis (free reshape for NCHW).
    img2d = img.reshape(rows, cols)
    mean_rows = jnp.broadcast_to(mean_f32[None, :], (N, C)).reshape(rows, 1)
    inv_std_rows = jnp.broadcast_to(inv_std_f32[None, :], (N, C)).reshape(rows, 1)

    row_block, col_block = _pick_blocks(rows, cols, itemsize)
    grid = (pl.cdiv(rows, row_block), pl.cdiv(cols, col_block))

    out2d = pl.pallas_call(
        _normalization_kernel,
        out_shape=jax.ShapeDtypeStruct((rows, cols), dtype),
        grid=grid,
        in_specs=[
            pl.BlockSpec((row_block, col_block), lambda r, c: (r, c)),
            pl.BlockSpec((row_block, 1), lambda r, c: (r, 0)),
            pl.BlockSpec((row_block, 1), lambda r, c: (r, 0)),
        ],
        out_specs=pl.BlockSpec((row_block, col_block), lambda r, c: (r, c)),
        compiler_params=pltpu.CompilerParams(
            dimension_semantics=("parallel", "parallel"),
            vmem_limit_bytes=_vmem_limit_bytes(row_block, col_block, itemsize),
        ),
    )(img2d, mean_rows, inv_std_rows)

    return out2d.reshape(N, C, H, W)


if __name__ == "__main__":
    key = jax.random.PRNGKey(0)
    N, C, H, W = 2, 4, 16, 16
    img = jax.random.normal(key, (N, C, H, W), dtype=jnp.float32)

    # Deterministic per-channel parameters (torch __init__ views mean/std as (-1,1,1)).
    mean = jnp.array([0.485, 0.456, 0.406, 0.5], dtype=jnp.float32)
    std = jnp.array([0.229, 0.224, 0.225, 0.25], dtype=jnp.float32)

    out = normalization(img, mean, std)
    out = jax.block_until_ready(out)

    # Reference check (plain JAX broadcast, same semantics as PyTorch).
    ref = (img - mean.reshape(1, C, 1, 1)) / std.reshape(1, C, 1, 1)
    assert out.shape == (N, C, H, W)
    assert jnp.allclose(out, ref, atol=1e-6, rtol=1e-5), float(jnp.max(jnp.abs(out - ref)))

    print("KERNEL_OK")
</pallas_src>

<mosaic_0001>
module attributes {stable_mosaic.version = 11 : i64} {
  func.func @_normalization_kernel(%arg0: i32, %arg1: i32, %arg2: memref<8x256xf32, #tpu.memory_space<vmem>>, %arg3: memref<8x1xf32, #tpu.memory_space<vmem>>, %arg4: memref<8x1xf32, #tpu.memory_space<vmem>>, %arg5: memref<8x256xf32, #tpu.memory_space<vmem>>) attributes {dimension_semantics = [#tpu.dimension_semantics<parallel>, #tpu.dimension_semantics<parallel>], iteration_bounds = array<i64: 1, 1>, scalar_prefetch = 0 : i64, scratch_operands = 0 : i64, tpu.core_type = #tpu.core_type<tc>, window_params = [{transform_indices = @transform_0, window_bounds = array<i64: 8, 256>}, {transform_indices = @transform_1, window_bounds = array<i64: 8, 1>}, {transform_indices = @transform_2, window_bounds = array<i64: 8, 1>}, {transform_indices = @transform_3, window_bounds = array<i64: 8, 256>}]} {
    %c0 = arith.constant 0 : index
    %c0_0 = arith.constant 0 : index
    %0 = vector.load %arg2[%c0, %c0_0] : memref<8x256xf32, #tpu.memory_space<vmem>>, vector<8x256xf32>
    %c0_1 = arith.constant 0 : index
    %c0_2 = arith.constant 0 : index
    %1 = vector.load %arg3[%c0_1, %c0_2] : memref<8x1xf32, #tpu.memory_space<vmem>>, vector<8x1xf32>
    %2 = vector.broadcast %1 : vector<8x1xf32> to vector<8x256xf32>
    %3 = arith.subf %0, %2 : vector<8x256xf32>
    %c0_3 = arith.constant 0 : index
    %c0_4 = arith.constant 0 : index
    %4 = vector.load %arg4[%c0_3, %c0_4] : memref<8x1xf32, #tpu.memory_space<vmem>>, vector<8x1xf32>
    %5 = vector.broadcast %4 : vector<8x1xf32> to vector<8x256xf32>
    %6 = arith.mulf %3, %5 : vector<8x256xf32>
    %c0_5 = arith.constant 0 : index
    %c0_6 = arith.constant 0 : index
    %7 = vector.load %arg5[%c0_5, %c0_6] : memref<8x256xf32, #tpu.memory_space<vmem>>, vector<8x256xf32>
    tpu.vector_store %arg5[%c0_5, %c0_6], %6 {strides = array<i32>} : memref<8x256xf32, #tpu.memory_space<vmem>>, vector<8x256xf32>,
    return
  }
  func.func @transform_0(%arg0: i32, %arg1: i32) -> (i32, i32) {
    %c0_i32 = arith.constant 0 : i32
    return %arg0, %arg1 : i32, i32
  }
  func.func @transform_1(%arg0: i32, %arg1: i32) -> (i32, i32) {
    %c0_i32 = arith.constant 0 : i32
    %c0_i32_0 = arith.constant 0 : i32
    return %arg0, %c0_i32 : i32, i32
  }
  func.func @transform_2(%arg0: i32, %arg1: i32) -> (i32, i32) {
    %c0_i32 = arith.constant 0 : i32
    %c0_i32_0 = arith.constant 0 : i32
    return %arg0, %c0_i32 : i32, i32
  }
  func.func @transform_3(%arg0: i32, %arg1: i32) -> (i32, i32) {
    %c0_i32 = arith.constant 0 : i32
    return %arg0, %arg1 : i32, i32
  }
}

</mosaic_0001>

<bundles_post_ra>
// kernel: tpu_custom_call.1
= control target key start
LH: loop header
LB: loop body
LE: loop exit
PB: predicated region body
PF: predicated region fallthrough
CT: control target
= control target key end

     0   :  { %s117_s0 = inlined_call_operand.vmem [shape: f32[8,256], index: 0, kind: input, shape index: {}]   ;;  %s118_s1 = inlined_call_operand.vmem [shape: f32[8,1], index: 1, kind: input, shape index: {}]   ;;  %s119_s2 = inlined_call_operand.vmem [shape: f32[8,1], index: 2, kind: input, shape index: {}]   ;;  %s120_s3 = inlined_call_operand.hbm [shape: f32[8,256], index: 3, kind: output, shape index: {}]  }
   0x1   :  { %v17_v0 = vld [vmem:[%s118_s1] sm:$0xff] }
   0x2   :  { %8 = vsyncpa [#allocation3], 0  ;;  %v80_v1 = vmov 0   ;;  %v25_v2 = vld [vmem:[%s119_s2] sm:$0xff]  ;;  %v16_v5 = vld [vmem:[%s117_s0 + $0x8] sm:$0xff]  ;;  %s81_s1 = smov [#allocation2]  }
   0x3   :  { %53 = vset.pattern.permute.xlu0 %v80_v1  ;;  %v15_v4 = vld [vmem:[%s117_s0] sm:$0xff]  ;;  %s40_s20 = sshll.u32 %s81_s1, 4  ;;  %s42_s23 = sshll.u32 %s120_s3, 4  ;;  %s41_s20 = int_to_ptr.vmem [resolvable:$true] %s40_s20  ;;  %s43_s23 = int_to_ptr.hbm [resolvable:$true] %s42_s23 }
   0x4   :  { %20 = vperm.xlu0 %53, %v17_v0  }
   0xc   :  { %28 = vperm.xlu0 %53, %v25_v2  }
  0x76   :  { %v21_v3 = vpop.permute.xlu0 %20 }
  0x77   :  { %v23_v6 = vsub.f32 %v15_v4, %v21_v3  ;;  %v24_v7 = vsub.f32 %v16_v5, %v21_v3 }
  0x7e   :  { %v29_v8 = vpop.permute.xlu0 %28 }
  0x7f   :  { %v31_v9 = vmul.f32 %v29_v8, %v23_v6  ;;  %v32_v10 = vmul.f32 %v29_v8, %v24_v7 }
  0x81   :  { %33 = vst [vmem:[#allocation2] sm:$0xff] %v31_v9 }
  0x82   :  { %34 = vst [vmem:[#allocation2 + $0x8] sm:$0xff] %v32_v10 }
  0x83   :  { %45 = dma.vmem_to_hbm [thread:$0]  %s41_s20, 256, %s43_s23, [#allocation3]  }
  0x84   :  { %78 = dma.done.wait [#allocation3], 256  }
  0x85   :  { %79 = vsyncadd [#allocation3], 4294967040 }
  0x86   :  { %50 = vsyncpa [#allocation3], 1 }

</bundles_post_ra>
